<compile_context>
chip_gen: v5e
topology: v5e:2x2
jax: 0.10.0
libtpu: 0.0.40
codegen_flags: <defaults>
</compile_context>

<pallas_src>
import functools

import numpy as np
import jax
import jax.numpy as jnp
from jax import lax
from jax.experimental import pallas as pl
from jax.experimental.pallas import tpu as pltpu

EPS = 1e-5
LANE = 128


def _round_up(x, m):
    return (x + m - 1) // m * m


def _cdiv(a, b):
    return (a + b - 1) // b


def _vmem_limit_bytes():
    """Generation-aware VMEM budget (v5e/v6e: ~96 MiB, v7x: ~48 MiB)."""
    cap = None
    try:
        cap = getattr(pltpu.get_tpu_info(), "vmem_capacity_bytes", None)
    except Exception:
        cap = None
    if not cap:
        cap = 64 * 1024 * 1024
    return int(min(cap * 3 // 4, 100 * 1024 * 1024))


# ---------------------------------------------------------------------------
# Pallas kernel: one (image, lane-tile) step of the fused conv + BN-bias + ReLU.
#   xa_ref : (1, Cin, L_TILE)  bf16  main lane tile of the flattened padded image
#   xh_ref : (1, Cin, HALO)    bf16  halo lanes immediately following the main tile
#   w_ref  : (Cout, k*k*Cin)   bf16  tap-stacked, BN-scale-folded weights
#   b_ref  : (Cout, 1)         f32   folded BN bias
#   o_ref  : (1, Cout, L_TILE) bf16  lane-dense dense (stride-1) conv output tile
#   rhs_ref: (k*k*Cin, L_TILE) bf16  VMEM scratch: tap-stacked RHS for the single dot
# ---------------------------------------------------------------------------
def _conv_bn_relu_kernel(xa_ref, xh_ref, w_ref, b_ref, o_ref, rhs_ref,
                         *, k, wp, cin, l_tile):
    # Build the tap-stacked RHS: row block t holds the image shifted by the tap offset
    # s = kh*Wp + kw.  Shifts are purely static; lanes past the tile end come from the
    # halo block.
    for t in range(k * k):
        kh, kw = divmod(t, k)
        s = kh * wp + kw
        r0 = t * cin
        if s == 0:
            rhs_ref[r0:r0 + cin, :] = xa_ref[0]
        else:
            rhs_ref[r0:r0 + cin, : l_tile - s] = xa_ref[0, :, s:]
            rhs_ref[r0:r0 + cin, l_tile - s:] = xh_ref[0, :, :s]

    # Single MXU contraction with K = k*k*Cin, accumulated in f32.
    acc = jnp.dot(w_ref[...], rhs_ref[...], preferred_element_type=jnp.float32)
    o_ref[0] = jnp.maximum(acc + b_ref[...], 0.0).astype(o_ref.dtype)


# ---------------------------------------------------------------------------
# Wrapper: NCHW in / NCHW out, matching nn.Conv2d(bias=False)+BatchNorm2d+ReLU
# ---------------------------------------------------------------------------
def conv_basic_forward(p, x):
    w, bn = p["w"], p["bn"]
    k, stride, pad = p["kernel"], p["stride"], p["padding"]
    N, Cin, H, W = x.shape
    Cout = w.shape[0]
    KK = k * k * Cin

    # Fold inference BatchNorm into a per-channel scale (into weights) and a bias.
    scale = bn["gamma"] / jnp.sqrt(bn["var"] + EPS)
    bias = (bn["beta"] - bn["mean"] * scale).reshape(Cout, 1).astype(jnp.float32)
    w_eff = w * scale[:, None, None, None]
    # Tap-stacked LHS: rows ordered (kh, kw, cin) to match the in-kernel RHS stacking.
    w_stk = jnp.transpose(w_eff, (0, 2, 3, 1)).reshape(Cout, KK).astype(jnp.bfloat16)

    # Geometry of the dense (stride-1) conv over the padded image, flat lane layout.
    Wp = W + 2 * pad                       # padded row length (flat stride of kh)
    Hd = H + 2 * pad - k + 1               # dense output rows
    Wd = W + 2 * pad - k + 1               # dense output cols (valid part of each row)
    Lout_dense = Hd * Wp                   # flat dense output length (junk cols trimmed later)
    smax = (k - 1) * Wp + (k - 1)          # largest tap shift
    halo = _round_up(smax + 1, LANE)       # lane-aligned halo (>= smax + 1)

    # Generation-aware VMEM budget -> lane-tile size (multiple of `halo`).
    vmem_limit = _vmem_limit_bytes()
    per_lane = (2 * Cout * 2          # output double-buffer (bf16)
                + 2 * 2 * Cin * 2     # main + halo input double-buffers (bf16)
                + KK * 2              # tap-stacked RHS scratch (bf16)
                + Cout * 4)           # f32 dot result
    fixed = 2 * (Cout * KK * 2 + Cout * 4) + (4 << 20)
    budget = max(vmem_limit - fixed, 0)
    lane_cap = 16384 if vmem_limit > (80 << 20) else 8192
    l_tile = max(halo, min(lane_cap, budget // max(per_lane, 1)))
    l_tile = _round_up(min(l_tile, _round_up(Lout_dense, halo)), halo)
    num_tiles = _cdiv(Lout_dense, l_tile)
    if N * num_tiles < 2:                  # keep both v7x TensorCores busy when possible
        smaller = _round_up(_cdiv(Lout_dense, 2), halo)
        if smaller < l_tile:
            l_tile = smaller
            num_tiles = _cdiv(Lout_dense, l_tile)
    L_total = num_tiles * l_tile
    hb = l_tile // halo                    # halo-blocks per main tile (exact)

    # Pad once (cast to bf16 FIRST), flatten spatial.  Extra bottom rows guarantee the
    # main + halo lane blocks stay in-bounds.
    Lin_needed = L_total + halo
    Hp_ext = _cdiv(Lin_needed, Wp)
    extra_rows = Hp_ext - (H + 2 * pad)    # >= 0 by construction
    xp = jnp.pad(x.astype(jnp.bfloat16),
                 ((0, 0), (0, 0), (pad, pad + extra_rows), (pad, pad)))
    x_flat = xp.reshape(N, Cin, Hp_ext * Wp)

    kern = functools.partial(_conv_bn_relu_kernel, k=k, wp=Wp, cin=Cin, l_tile=l_tile)

    out = pl.pallas_call(
        kern,
        out_shape=jax.ShapeDtypeStruct((N, Cout, L_total), jnp.bfloat16),
        grid=(N, num_tiles),
        in_specs=[
            pl.BlockSpec((1, Cin, l_tile), lambda n, j: (n, 0, j)),
            pl.BlockSpec((1, Cin, halo), lambda n, j: (n, 0, (j + 1) * hb)),
            pl.BlockSpec((Cout, KK), lambda n, j: (0, 0)),
            pl.BlockSpec((Cout, 1), lambda n, j: (0, 0)),
        ],
        out_specs=pl.BlockSpec((1, Cout, l_tile), lambda n, j: (n, 0, j)),
        scratch_shapes=[pltpu.VMEM((KK, l_tile), jnp.bfloat16)],
        compiler_params=pltpu.CompilerParams(
            dimension_semantics=("parallel", "parallel"),
            vmem_limit_bytes=vmem_limit,
        ),
    )(x_flat, x_flat, w_stk, bias)

    # Trim the dense flat map to NCHW and apply the conv stride (one fused XLA pass:
    # reads bf16, writes trimmed f32).
    Hout = (H + 2 * pad - k) // stride + 1
    Wout = (W + 2 * pad - k) // stride + 1
    dense = out[:, :, : Hd * Wp].reshape(N, Cout, Hd, Wp)[:, :, :, :Wd]
    y = dense[:, :, ::stride, ::stride][:, :, :Hout, :Wout].astype(jnp.float32)
    return y


# ---------------------------------------------------------------------------
# Deterministic parameter construction mirroring the PyTorch __init__
# ---------------------------------------------------------------------------
def make_conv_basic(key, nIn, nOut, kernel=3, stride=1, padding=1):
    kw_, kb_ = jax.random.split(key, 2)
    fan_in = nIn * kernel * kernel
    w = jax.random.normal(kw_, (nOut, nIn, kernel, kernel), jnp.float32) / np.sqrt(fan_in)
    k1, k2, k3, k4 = jax.random.split(kb_, 4)
    bn = dict(
        gamma=1.0 + 0.1 * jax.random.normal(k1, (nOut,), jnp.float32),
        beta=0.1 * jax.random.normal(k2, (nOut,), jnp.float32),
        mean=0.1 * jax.random.normal(k3, (nOut,), jnp.float32),
        var=1.0 + 0.1 * jnp.abs(jax.random.normal(k4, (nOut,), jnp.float32)),
    )
    return dict(w=w, bn=bn, kernel=kernel, stride=stride, padding=padding)


# ---------------------------------------------------------------------------
if __name__ == "__main__":
    key = jax.random.PRNGKey(0)
    N, nIn, nOut, H, W = 2, 4, 8, 16, 16

    kp, kx = jax.random.split(key)
    params = make_conv_basic(kp, nIn, nOut)              # kernel=3, stride=1, padding=1
    x = jax.random.normal(kx, (N, nIn, H, W), jnp.float32)

    fwd = jax.jit(functools.partial(conv_basic_forward, params))
    y = jax.block_until_ready(fwd(x))

    assert y.shape == (N, nOut, H, W), y.shape
    assert bool(jnp.all(jnp.isfinite(y)))

    # Reference: same bf16-rounded operands, exact f32 conv, folded BN, ReLU.
    scale = params["bn"]["gamma"] / jnp.sqrt(params["bn"]["var"] + EPS)
    bias = params["bn"]["beta"] - params["bn"]["mean"] * scale
    w_eff = (params["w"] * scale[:, None, None, None]).astype(jnp.bfloat16).astype(jnp.float32)
    x_rt = x.astype(jnp.bfloat16).astype(jnp.float32)
    ref = lax.conv_general_dilated(
        x_rt, w_eff, window_strides=(1, 1), padding=((1, 1), (1, 1)),
        dimension_numbers=("NCHW", "OIHW", "NCHW"),
        precision=lax.Precision.HIGHEST)
    ref = jnp.maximum(ref + bias[None, :, None, None], 0.0)
    # Kernel output is bf16 (extra ~2e-3 relative rounding) — compare at 1e-2.
    np.testing.assert_allclose(np.asarray(y), np.asarray(ref), rtol=1e-2, atol=1e-2)

    print("KERNEL_OK")
</pallas_src>

<mosaic_0001>
module attributes {stable_mosaic.version = 11 : i64} {
  func.func @_conv_bn_relu_kernel(%arg0: i32, %arg1: i32, %arg2: memref<1x4x384xbf16, #tpu.memory_space<vmem>>, %arg3: memref<1x4x128xbf16, #tpu.memory_space<vmem>>, %arg4: memref<8x36xbf16, #tpu.memory_space<vmem>>, %arg5: memref<8x1xf32, #tpu.memory_space<vmem>>, %arg6: memref<1x8x384xbf16, #tpu.memory_space<vmem>>, %arg7: memref<36x384xbf16, #tpu.memory_space<vmem>>) attributes {dimension_semantics = [#tpu.dimension_semantics<parallel>, #tpu.dimension_semantics<parallel>], iteration_bounds = array<i64: 2, 1>, scalar_prefetch = 0 : i64, scratch_operands = 1 : i64, tpu.core_type = #tpu.core_type<tc>, window_params = [{transform_indices = @transform_0, window_bounds = array<i64: 1, 4, 384>}, {transform_indices = @transform_1, window_bounds = array<i64: 1, 4, 128>}, {pipeline_mode = #tpu.pipeline_mode<synchronous>, transform_indices = @transform_2, window_bounds = array<i64: 8, 36>}, {pipeline_mode = #tpu.pipeline_mode<synchronous>, transform_indices = @transform_3, window_bounds = array<i64: 8, 1>}, {transform_indices = @transform_4, window_bounds = array<i64: 1, 8, 384>}]} {
    %c0 = arith.constant 0 : index
    %c0_0 = arith.constant 0 : index
    %c0_1 = arith.constant 0 : index
    %0 = vector.load %arg2[%c0, %c0_0, %c0_1] : memref<1x4x384xbf16, #tpu.memory_space<vmem>>, vector<1x4x384xbf16>
    %1 = vector.shape_cast %0 : vector<1x4x384xbf16> to vector<4x384xbf16>
    %c0_2 = arith.constant 0 : index
    %c0_3 = arith.constant 0 : index
    %2 = vector.load %arg7[%c0_2, %c0_3] : memref<36x384xbf16, #tpu.memory_space<vmem>>, vector<4x384xbf16>
    tpu.vector_store %arg7[%c0_2, %c0_3], %1 {strides = array<i32>} : memref<36x384xbf16, #tpu.memory_space<vmem>>, vector<4x384xbf16>,
    %c0_4 = arith.constant 0 : index
    %c0_5 = arith.constant 0 : index
    %c1 = arith.constant 1 : index
    %3 = vector.load %arg2[%c0_4, %c0_5, %c1] : memref<1x4x384xbf16, #tpu.memory_space<vmem>>, vector<1x4x383xbf16>
    %4 = vector.shape_cast %3 : vector<1x4x383xbf16> to vector<4x383xbf16>
    %c4 = arith.constant 4 : index
    %c0_6 = arith.constant 0 : index
    %5 = vector.load %arg7[%c4, %c0_6] : memref<36x384xbf16, #tpu.memory_space<vmem>>, vector<4x383xbf16>
    tpu.vector_store %arg7[%c4, %c0_6], %4 {strides = array<i32>} : memref<36x384xbf16, #tpu.memory_space<vmem>>, vector<4x383xbf16>,
    %c0_7 = arith.constant 0 : index
    %c0_8 = arith.constant 0 : index
    %c0_9 = arith.constant 0 : index
    %6 = vector.load %arg3[%c0_7, %c0_8, %c0_9] : memref<1x4x128xbf16, #tpu.memory_space<vmem>>, vector<1x4x1xbf16>
    %7 = vector.shape_cast %6 : vector<1x4x1xbf16> to vector<4x1xbf16>
    %c4_10 = arith.constant 4 : index
    %c383 = arith.constant 383 : index
    %8 = vector.load %arg7[%c4_10, %c383] : memref<36x384xbf16, #tpu.memory_space<vmem>>, vector<4x1xbf16>
    tpu.vector_store %arg7[%c4_10, %c383], %7 {strides = array<i32>} : memref<36x384xbf16, #tpu.memory_space<vmem>>, vector<4x1xbf16>,
    %c0_11 = arith.constant 0 : index
    %c0_12 = arith.constant 0 : index
    %c2 = arith.constant 2 : index
    %9 = vector.load %arg2[%c0_11, %c0_12, %c2] : memref<1x4x384xbf16, #tpu.memory_space<vmem>>, vector<1x4x382xbf16>
    %10 = vector.shape_cast %9 : vector<1x4x382xbf16> to vector<4x382xbf16>
    %c8 = arith.constant 8 : index
    %c0_13 = arith.constant 0 : index
    %11 = vector.load %arg7[%c8, %c0_13] : memref<36x384xbf16, #tpu.memory_space<vmem>>, vector<4x382xbf16>
    tpu.vector_store %arg7[%c8, %c0_13], %10 {strides = array<i32>} : memref<36x384xbf16, #tpu.memory_space<vmem>>, vector<4x382xbf16>,
    %c0_14 = arith.constant 0 : index
    %c0_15 = arith.constant 0 : index
    %c0_16 = arith.constant 0 : index
    %12 = vector.load %arg3[%c0_14, %c0_15, %c0_16] : memref<1x4x128xbf16, #tpu.memory_space<vmem>>, vector<1x4x2xbf16>
    %13 = vector.shape_cast %12 : vector<1x4x2xbf16> to vector<4x2xbf16>
    %c8_17 = arith.constant 8 : index
    %c382 = arith.constant 382 : index
    %14 = vector.load %arg7[%c8_17, %c382] : memref<36x384xbf16, #tpu.memory_space<vmem>>, vector<4x2xbf16>
    tpu.vector_store %arg7[%c8_17, %c382], %13 {strides = array<i32>} : memref<36x384xbf16, #tpu.memory_space<vmem>>, vector<4x2xbf16>,
    %c0_18 = arith.constant 0 : index
    %c0_19 = arith.constant 0 : index
    %c18 = arith.constant 18 : index
    %15 = vector.load %arg2[%c0_18, %c0_19, %c18] : memref<1x4x384xbf16, #tpu.memory_space<vmem>>, vector<1x4x366xbf16>
    %16 = vector.shape_cast %15 : vector<1x4x366xbf16> to vector<4x366xbf16>
    %c12 = arith.constant 12 : index
    %c0_20 = arith.constant 0 : index
    %17 = vector.load %arg7[%c12, %c0_20] : memref<36x384xbf16, #tpu.memory_space<vmem>>, vector<4x366xbf16>
    tpu.vector_store %arg7[%c12, %c0_20], %16 {strides = array<i32>} : memref<36x384xbf16, #tpu.memory_space<vmem>>, vector<4x366xbf16>,
    %c0_21 = arith.constant 0 : index
    %c0_22 = arith.constant 0 : index
    %c0_23 = arith.constant 0 : index
    %18 = vector.load %arg3[%c0_21, %c0_22, %c0_23] : memref<1x4x128xbf16, #tpu.memory_space<vmem>>, vector<1x4x18xbf16>
    %19 = vector.shape_cast %18 : vector<1x4x18xbf16> to vector<4x18xbf16>
    %c12_24 = arith.constant 12 : index
    %c366 = arith.constant 366 : index
    %20 = vector.load %arg7[%c12_24, %c366] : memref<36x384xbf16, #tpu.memory_space<vmem>>, vector<4x18xbf16>
    tpu.vector_store %arg7[%c12_24, %c366], %19 {strides = array<i32>} : memref<36x384xbf16, #tpu.memory_space<vmem>>, vector<4x18xbf16>,
    %c0_25 = arith.constant 0 : index
    %c0_26 = arith.constant 0 : index
    %c19 = arith.constant 19 : index
    %21 = vector.load %arg2[%c0_25, %c0_26, %c19] : memref<1x4x384xbf16, #tpu.memory_space<vmem>>, vector<1x4x365xbf16>
    %22 = vector.shape_cast %21 : vector<1x4x365xbf16> to vector<4x365xbf16>
    %c16 = arith.constant 16 : index
    %c0_27 = arith.constant 0 : index
    %23 = vector.load %arg7[%c16, %c0_27] : memref<36x384xbf16, #tpu.memory_space<vmem>>, vector<4x365xbf16>
    tpu.vector_store %arg7[%c16, %c0_27], %22 {strides = array<i32>} : memref<36x384xbf16, #tpu.memory_space<vmem>>, vector<4x365xbf16>,
    %c0_28 = arith.constant 0 : index
    %c0_29 = arith.constant 0 : index
    %c0_30 = arith.constant 0 : index
    %24 = vector.load %arg3[%c0_28, %c0_29, %c0_30] : memref<1x4x128xbf16, #tpu.memory_space<vmem>>, vector<1x4x19xbf16>
    %25 = vector.shape_cast %24 : vector<1x4x19xbf16> to vector<4x19xbf16>
    %c16_31 = arith.constant 16 : index
    %c365 = arith.constant 365 : index
    %26 = vector.load %arg7[%c16_31, %c365] : memref<36x384xbf16, #tpu.memory_space<vmem>>, vector<4x19xbf16>
    tpu.vector_store %arg7[%c16_31, %c365], %25 {strides = array<i32>} : memref<36x384xbf16, #tpu.memory_space<vmem>>, vector<4x19xbf16>,
    %c0_32 = arith.constant 0 : index
    %c0_33 = arith.constant 0 : index
    %c20 = arith.constant 20 : index
    %27 = vector.load %arg2[%c0_32, %c0_33, %c20] : memref<1x4x384xbf16, #tpu.memory_space<vmem>>, vector<1x4x364xbf16>
    %28 = vector.shape_cast %27 : vector<1x4x364xbf16> to vector<4x364xbf16>
    %c20_34 = arith.constant 20 : index
    %c0_35 = arith.constant 0 : index
    %29 = vector.load %arg7[%c20_34, %c0_35] : memref<36x384xbf16, #tpu.memory_space<vmem>>, vector<4x364xbf16>
    tpu.vector_store %arg7[%c20_34, %c0_35], %28 {strides = array<i32>} : memref<36x384xbf16, #tpu.memory_space<vmem>>, vector<4x364xbf16>,
    %c0_36 = arith.constant 0 : index
    %c0_37 = arith.constant 0 : index
    %c0_38 = arith.constant 0 : index
    %30 = vector.load %arg3[%c0_36, %c0_37, %c0_38] : memref<1x4x128xbf16, #tpu.memory_space<vmem>>, vector<1x4x20xbf16>
    %31 = vector.shape_cast %30 : vector<1x4x20xbf16> to vector<4x20xbf16>
    %c20_39 = arith.constant 20 : index
    %c364 = arith.constant 364 : index
    %32 = vector.load %arg7[%c20_39, %c364] : memref<36x384xbf16, #tpu.memory_space<vmem>>, vector<4x20xbf16>
    tpu.vector_store %arg7[%c20_39, %c364], %31 {strides = array<i32>} : memref<36x384xbf16, #tpu.memory_space<vmem>>, vector<4x20xbf16>,
    %c0_40 = arith.constant 0 : index
    %c0_41 = arith.constant 0 : index
    %c36 = arith.constant 36 : index
    %33 = vector.load %arg2[%c0_40, %c0_41, %c36] : memref<1x4x384xbf16, #tpu.memory_space<vmem>>, vector<1x4x348xbf16>
    %34 = vector.shape_cast %33 : vector<1x4x348xbf16> to vector<4x348xbf16>
    %c24 = arith.constant 24 : index
    %c0_42 = arith.constant 0 : index
    %35 = vector.load %arg7[%c24, %c0_42] : memref<36x384xbf16, #tpu.memory_space<vmem>>, vector<4x348xbf16>
    tpu.vector_store %arg7[%c24, %c0_42], %34 {strides = array<i32>} : memref<36x384xbf16, #tpu.memory_space<vmem>>, vector<4x348xbf16>,
    %c0_43 = arith.constant 0 : index
    %c0_44 = arith.constant 0 : index
    %c0_45 = arith.constant 0 : index
    %36 = vector.load %arg3[%c0_43, %c0_44, %c0_45] : memref<1x4x128xbf16, #tpu.memory_space<vmem>>, vector<1x4x36xbf16>
    %37 = vector.shape_cast %36 : vector<1x4x36xbf16> to vector<4x36xbf16>
    %c24_46 = arith.constant 24 : index
    %c348 = arith.constant 348 : index
    %38 = vector.load %arg7[%c24_46, %c348] : memref<36x384xbf16, #tpu.memory_space<vmem>>, vector<4x36xbf16>
    tpu.vector_store %arg7[%c24_46, %c348], %37 {strides = array<i32>} : memref<36x384xbf16, #tpu.memory_space<vmem>>, vector<4x36xbf16>,
    %c0_47 = arith.constant 0 : index
    %c0_48 = arith.constant 0 : index
    %c37 = arith.constant 37 : index
    %39 = vector.load %arg2[%c0_47, %c0_48, %c37] : memref<1x4x384xbf16, #tpu.memory_space<vmem>>, vector<1x4x347xbf16>
    %40 = vector.shape_cast %39 : vector<1x4x347xbf16> to vector<4x347xbf16>
    %c28 = arith.constant 28 : index
    %c0_49 = arith.constant 0 : index
    %41 = vector.load %arg7[%c28, %c0_49] : memref<36x384xbf16, #tpu.memory_space<vmem>>, vector<4x347xbf16>
    tpu.vector_store %arg7[%c28, %c0_49], %40 {strides = array<i32>} : memref<36x384xbf16, #tpu.memory_space<vmem>>, vector<4x347xbf16>,
    %c0_50 = arith.constant 0 : index
    %c0_51 = arith.constant 0 : index
    %c0_52 = arith.constant 0 : index
    %42 = vector.load %arg3[%c0_50, %c0_51, %c0_52] : memref<1x4x128xbf16, #tpu.memory_space<vmem>>, vector<1x4x37xbf16>
    %43 = vector.shape_cast %42 : vector<1x4x37xbf16> to vector<4x37xbf16>
    %c28_53 = arith.constant 28 : index
    %c347 = arith.constant 347 : index
    %44 = vector.load %arg7[%c28_53, %c347] : memref<36x384xbf16, #tpu.memory_space<vmem>>, vector<4x37xbf16>
    tpu.vector_store %arg7[%c28_53, %c347], %43 {strides = array<i32>} : memref<36x384xbf16, #tpu.memory_space<vmem>>, vector<4x37xbf16>,
    %c0_54 = arith.constant 0 : index
    %c0_55 = arith.constant 0 : index
    %c38 = arith.constant 38 : index
    %45 = vector.load %arg2[%c0_54, %c0_55, %c38] : memref<1x4x384xbf16, #tpu.memory_space<vmem>>, vector<1x4x346xbf16>
    %46 = vector.shape_cast %45 : vector<1x4x346xbf16> to vector<4x346xbf16>
    %c32 = arith.constant 32 : index
    %c0_56 = arith.constant 0 : index
    %47 = vector.load %arg7[%c32, %c0_56] : memref<36x384xbf16, #tpu.memory_space<vmem>>, vector<4x346xbf16>
    tpu.vector_store %arg7[%c32, %c0_56], %46 {strides = array<i32>} : memref<36x384xbf16, #tpu.memory_space<vmem>>, vector<4x346xbf16>,
    %c0_57 = arith.constant 0 : index
    %c0_58 = arith.constant 0 : index
    %c0_59 = arith.constant 0 : index
    %48 = vector.load %arg3[%c0_57, %c0_58, %c0_59] : memref<1x4x128xbf16, #tpu.memory_space<vmem>>, vector<1x4x38xbf16>
    %49 = vector.shape_cast %48 : vector<1x4x38xbf16> to vector<4x38xbf16>
    %c32_60 = arith.constant 32 : index
    %c346 = arith.constant 346 : index
    %50 = vector.load %arg7[%c32_60, %c346] : memref<36x384xbf16, #tpu.memory_space<vmem>>, vector<4x38xbf16>
    tpu.vector_store %arg7[%c32_60, %c346], %49 {strides = array<i32>} : memref<36x384xbf16, #tpu.memory_space<vmem>>, vector<4x38xbf16>,
    %c0_61 = arith.constant 0 : index
    %c0_62 = arith.constant 0 : index
    %51 = vector.load %arg4[%c0_61, %c0_62] : memref<8x36xbf16, #tpu.memory_space<vmem>>, vector<8x36xbf16>
    %c0_63 = arith.constant 0 : index
    %c0_64 = arith.constant 0 : index
    %52 = vector.load %arg7[%c0_63, %c0_64] : memref<36x384xbf16, #tpu.memory_space<vmem>>, vector<36x384xbf16>
    %cst = arith.constant dense<0.000000e+00> : vector<8x384xf32>
    %53 = tpu.matmul %51, %52, %cst {dimension_numbers = #tpu.dot_dimension_numbers<[1], [0], [0], [1], [0, 0, 1, 1], [], []>} : vector<8x36xbf16>, vector<36x384xbf16>, vector<8x384xf32> -> vector<8x384xf32>
    %c0_65 = arith.constant 0 : index
    %c0_66 = arith.constant 0 : index
    %54 = vector.load %arg5[%c0_65, %c0_66] : memref<8x1xf32, #tpu.memory_space<vmem>>, vector<8x1xf32>
    %55 = vector.broadcast %54 : vector<8x1xf32> to vector<8x384xf32>
    %56 = arith.addf %53, %55 : vector<8x384xf32>
    %cst_67 = arith.constant 0.000000e+00 : f32
    %57 = vector.broadcast %cst_67 : f32 to vector<8x384xf32>
    %58 = arith.maximumf %56, %57 : vector<8x384xf32>
    %59 = arith.truncf %58 : vector<8x384xf32> to vector<8x384xbf16>
    %c0_68 = arith.constant 0 : index
    %c0_69 = arith.constant 0 : index
    %c0_70 = arith.constant 0 : index
    %60 = vector.load %arg6[%c0_68, %c0_69, %c0_70] : memref<1x8x384xbf16, #tpu.memory_space<vmem>>, vector<1x8x384xbf16>
    %61 = vector.shape_cast %60 : vector<1x8x384xbf16> to vector<8x384xbf16>
    %62 = vector.shape_cast %59 : vector<8x384xbf16> to vector<1x8x384xbf16>
    tpu.vector_store %arg6[%c0_68, %c0_69, %c0_70], %62 {strides = array<i32>} : memref<1x8x384xbf16, #tpu.memory_space<vmem>>, vector<1x8x384xbf16>,
    return
  }
  func.func @transform_0(%arg0: i32, %arg1: i32) -> (i32, i32, i32) {
    %c0_i32 = arith.constant 0 : i32
    %c0_i32_0 = arith.constant 0 : i32
    return %arg0, %c0_i32, %arg1 : i32, i32, i32
  }
  func.func @transform_1(%arg0: i32, %arg1: i32) -> (i32, i32, i32) {
    %c1_i32 = arith.constant 1 : i32
    %0 = arith.addi %arg1, %c1_i32 : i32
    %c3_i32 = arith.constant 3 : i32
    %1 = arith.muli %0, %c3_i32 : i32
    %c0_i32 = arith.constant 0 : i32
    %c0_i32_0 = arith.constant 0 : i32
    return %arg0, %c0_i32, %1 : i32, i32, i32
  }
  func.func @transform_2(%arg0: i32, %arg1: i32) -> (i32, i32) {
    %c0_i32 = arith.constant 0 : i32
    %c0_i32_0 = arith.constant 0 : i32
    %c0_i32_1 = arith.constant 0 : i32
    return %c0_i32, %c0_i32_0 : i32, i32
  }
  func.func @transform_3(%arg0: i32, %arg1: i32) -> (i32, i32) {
    %c0_i32 = arith.constant 0 : i32
    %c0_i32_0 = arith.constant 0 : i32
    %c0_i32_1 = arith.constant 0 : i32
    return %c0_i32, %c0_i32_0 : i32, i32
  }
  func.func @transform_4(%arg0: i32, %arg1: i32) -> (i32, i32, i32) {
    %c0_i32 = arith.constant 0 : i32
    %c0_i32_0 = arith.constant 0 : i32
    return %arg0, %c0_i32, %arg1 : i32, i32, i32
  }
}

</mosaic_0001>

<bundles_post_ra>
// kernel: conv_basic_forward.1
= control target key start
LH: loop header
LB: loop body
LE: loop exit
PB: predicated region body
PF: predicated region fallthrough
CT: control target
= control target key end

     0   :  { %s932_s15 = smov 0   ;;  %s934_s16 = smov 0   ;;  %s1039_s0 = inlined_call_operand.vmem [shape: bf16[2,4,522], index: 0, kind: input, shape index: {}, may-alias: {0,1}]   ;;  %s1040_s1 = inlined_call_operand.vmem [shape: bf16[2,4,522], index: 1, kind: input, shape index: {}, may-alias: {0,1}]   ;;  %s1041_s2 = inlined_call_operand.vmem [shape: bf16[8,36], index: 2, kind: input, shape index: {}]   ;;  %s1042_s3 = inlined_call_operand.vmem [shape: f32[8,1], index: 3, kind: input, shape index: {}]   ;;  %s1043_s4 = inlined_call_operand.vmem [shape: bf16[2,8,384], index: 4, kind: output, shape index: {}]  }
   0x1   :  { %s936_s17 = smov 0  }
   0x2 LB: > { %s26_s18 = sadd.s32 1, %s892_s16  ;;  %p795_p0 = scmp.ge.s32.totalorder %s896_s17, 1  ;;  %s896_s17 = sphi %s936_s17, %s14_s17   ;;  %s892_s16 = sphi %s934_s16, %s1045_s16   ;;  %s888_s15 = sphi %s932_s15, %s1044_s15  }
   0x3   : > { %p28_p1 = scmp.ge.s32.totalorder %s26_s18, 2  ;;  %p214_p2 = scmp.lt.s32.totalorder %s896_s17, 3 }
   0x5   : > { %s1047_s18 = smov (%p28_p1, %s26_s18), 0  ;;  %p215_p3 = pnand %p795_p0, %p214_p2 }
   0x6   : > { %p267_p4 = scmp.lt.s32.totalorder (!%p215_p3), %s888_s15, 1  ;;  %s898_s27 = smov (!%p215_p3), 127  }
   0x7   : > { %218 = sbr.rel (%p215_p3) target bundleno = 435 (0x1b3), region = 36  ;;  %s899_s28 = smov (!%p215_p3), 126  }
   0x8   : > { %s900_s29 = smov (!%p215_p3), 110   ;;  %s901_s30 = smov (!%p215_p3), 109  }
   0x9   : > { %s902_s5 = smov (!%p215_p3), 108   ;;  %s903_s6 = smov (!%p215_p3), 92  }
   0xa   : > { %s904_s7 = smov (!%p215_p3), 91   ;;  %s905_s8 = smov (!%p215_p3), 90  }
   0xc   : > { %s1049_s15 = smov (!%p267_p4, %s888_s15), 1  ;;  %vm397_vm0 = vcmask 896002   ;;  %vm333_vm1 = vcmask 1035266   ;;  %vm365_vm2 = vcmask 1025024   ;;  %vm461_vm3 = vcmask 879618  }
   0xd   : > { %s836_s19 = smul.u32 10, %s1049_s15  ;;  %vm472_vm4 = vcmask 1044322   ;;  %vm429_vm5 = vcmask 885760   ;;  %vm326_vm6 = vcmask 1043456   ;;  %vm424_vm7 = vcmask 891904  }
   0xe   : > { %vm493_vm8 = vcmask 746496   ;;  %vm439_vm9 = vcmask 1042280   ;;  %vm456_vm10 = vcmask 883712   ;;  %vm408_vm11 = vcmask 1044338   ;;  %s838_s13 = smul.u32 12, %s1049_s15 }
   0xf   : > { %s956_s22 = scalar_lea.vmem %s1039_s0, %s836_s19  ;;  %s829_s23 = sadd.s32 6, %s836_s19  ;;  %vm488_vm12 = vcmask 752640   ;;  %vm503_vm13 = vcmask 1042144   ;;  %vm392_vm14 = vcmask 900096   ;;  %vm525_vm15 = vcmask 740354  }
  0x10   : > { %v303_v0 = vld [vmem:[%s956_s22] sm:$0x3f]  ;;  %s963_s26 = scalar_lea.vmem %s1040_s1, %s829_s23  ;;  %s300_s20 = scalar_lea.vmem %s1043_s4, %s838_s13 }
  0x11   : > { %305 = vst [vmem:[#allocation1] ss:$2 sm:$0xff] %v303_v0  ;;  %v312_v1 = vld [vmem:[%s956_s22] sm:$0x3f] }
  0x12   : > { %v335_v4 = vld [vmem:[%s963_s26] sm:$0x3] }
  0x13   : > { %v346_v7 = vld [vmem:[%s956_s22] sm:$0x3f] }
  0x14   : > { %v367_v9 = vld [vmem:[%s963_s26] sm:$0x3] }
  0x15   : > { %v377_v12 = vld [vmem:[%s956_s22] sm:$0x3f] }
  0x16   : > { %v399_v14 = vld [vmem:[%s963_s26] sm:$0x3] }
  0x17   : > { %v410_v17 = vld [vmem:[%s956_s22] sm:$0x3f] }
  0x18   : > { %v306_v2 = vld.sshfl [vmem:[#allocation1] sm:$0xff pattern:$0x75643120]  ;;  %v307_v3 = vld.sshfl [vmem:[#allocation1 + $0x8] sm:$0xff pattern:$0x75643120] }
  0x19   : > { %315 = vst [vmem:[#allocation1 + $0x1] ss:$2 sm:$0xff] %v312_v1  ;;  %v431_v19 = vld [vmem:[%s963_s26] sm:$0x3] }
  0x1a   : > { %310 = vst [vmem:[#allocation2] sm:$0x33] %v306_v2  ;;  %v441_v22 = vld [vmem:[%s956_s22] sm:$0x3f] }
  0x1b   : > { %311 = vst [vmem:[#allocation2 + $0x8] sm:$0x3] %v307_v3  ;;  %v463_v24 = vld [vmem:[%s963_s26] sm:$0x3] }
  0x1c   : > { %v474_v27 = vld [vmem:[%s956_s22] sm:$0x3f] }
  0x1d   : > { %v495_v29 = vld [vmem:[%s963_s26] sm:$0x3] }
  0x1e   : > { %v505_v32 = vld [vmem:[%s956_s22] sm:$0x3f] }
  0x1f   : > { %v527_v34 = vld [vmem:[%s963_s26] sm:$0x3] }
  0x20   : > { %v966_v5 = vld.sshfl [vmem:[#allocation1] sm:$0xff pattern:$0x75643120]  ;;  %v318_v6 = vld.sshfl [vmem:[#allocation1 + $0x8] sm:$0xff pattern:$0x75643120] }
  0x21   : > { %338 = vst [vmem:[#allocation1 + $0x1] ss:$2 sm:$0xff] %v335_v4  ;;  %322 = vrot.lane.b32.xlu0 %v318_v6, %s898_s27  ;;  %v538_v37 = vld [vmem:[%s956_s22] sm:$0x3f] }
  0x22   : > { %v559_v39 = vld [vmem:[%s963_s26] sm:$0x3] }
  0x28   : > { %v970_v8 = vld.sshfl [vmem:[#allocation1] sm:$0xff pattern:$0x75643120] }
  0x29   : > { %348 = vst [vmem:[#allocation1] ss:$2 sm:$0xff] %v346_v7 }
  0x30   : > { %v973_v10 = vld.sshfl [vmem:[#allocation1] sm:$0xff pattern:$0x75643120]  ;;  %v351_v11 = vld.sshfl [vmem:[#allocation1 + $0x8] sm:$0xff pattern:$0x75643120] }
  0x31   : > { %369 = vst [vmem:[#allocation1] ss:$2 sm:$0xff] %v367_v9  ;;  %355 = vrot.lane.b32.xlu1 %v351_v11, %s899_s28 }
  0x38   : > { %v977_v13 = vld.sshfl [vmem:[#allocation1] sm:$0xff pattern:$0x75643120] }
  0x39   : > { %380 = vst [vmem:[#allocation1 + $0x1] ss:$2 sm:$0xff] %v377_v12 }
  0x40   : > { %v383_v15 = vld.sshfl [vmem:[#allocation1 + $0x8] sm:$0xff pattern:$0x75643120]  ;;  %v381_v16 = vld.sshfl [vmem:[#allocation1] sm:$0xff pattern:$0x75643120] }
  0x41   : > { %387 = vrot.lane.b32.xlu2 %v383_v15, %s900_s29  ;;  %402 = vst [vmem:[#allocation1 + $0x1] ss:$2 sm:$0xff] %v399_v14 }
  0x48   : > { %v403_v18 = vld.sshfl [vmem:[#allocation1] sm:$0xff pattern:$0x75643120] }
  0x49   : > { %412 = vst [vmem:[#allocation1] ss:$2 sm:$0xff] %v410_v17 }
  0x50   : > { %v413_v20 = vld.sshfl [vmem:[#allocation1] sm:$0xff pattern:$0x75643120]  ;;  %v415_v21 = vld.sshfl [vmem:[#allocation1 + $0x8] sm:$0xff pattern:$0x75643120] }
  0x51   : > { %417 = vrot.lane.b32.xlu2 %v413_v20, %s901_s30  ;;  %433 = vst [vmem:[#allocation1] ss:$2 sm:$0xff] %v431_v19  ;;  %419 = vrot.lane.b32.xlu1 %v415_v21, %s901_s30 }
  0x58   : > { %v434_v23 = vld.sshfl [vmem:[#allocation1] sm:$0xff pattern:$0x75643120] }
  0x59   : > { %444 = vst [vmem:[#allocation1 + $0x1] ss:$2 sm:$0xff] %v441_v22  ;;  %436 = vrot.lane.b32.xlu1 %v434_v23, %s901_s30 }
  0x60   : > { %v447_v25 = vld.sshfl [vmem:[#allocation1 + $0x8] sm:$0xff pattern:$0x75643120]  ;;  %v445_v26 = vld.sshfl [vmem:[#allocation1] sm:$0xff pattern:$0x75643120] }
  0x61   : > { %451 = vrot.lane.b32.xlu2 %v447_v25, %s902_s5  ;;  %449 = vrot.lane.b32.xlu0 %v445_v26, %s902_s5  ;;  %466 = vst [vmem:[#allocation1 + $0x1] ss:$2 sm:$0xff] %v463_v24  ;;  %v580_v24 = vld [vmem:[%s1042_s3] sm:$0xff]  ;;  %v906_v25 = vmov 0  }
  0x62   : > { %873 = vset.pattern.permute.xlu0 %v906_v25 }
  0x68   : > { %v467_v28 = vld.sshfl [vmem:[#allocation1] sm:$0xff pattern:$0x75643120] }
  0x69   : > { %469 = vrot.lane.b32.xlu2 %v467_v28, %s902_s5  ;;  %476 = vst [vmem:[#allocation1] ss:$2 sm:$0xff] %v474_v27 }
  0x70   : > { %v479_v30 = vld.sshfl [vmem:[#allocation1 + $0x8] sm:$0xff pattern:$0x75643120]  ;;  %v477_v31 = vld.sshfl [vmem:[#allocation1] sm:$0xff pattern:$0x75643120] }
  0x71   : > { %483 = vrot.lane.b32.xlu2 %v479_v30, %s903_s6  ;;  %497 = vst [vmem:[#allocation1] ss:$2 sm:$0xff] %v495_v29  ;;  %481 = vrot.lane.b32.xlu1 %v477_v31, %s903_s6 }
  0x78   : > { %v498_v33 = vld.sshfl [vmem:[#allocation1] sm:$0xff pattern:$0x75643120] }
  0x79   : > { %500 = vrot.lane.b32.xlu0 %v498_v33, %s903_s6  ;;  %508 = vst [vmem:[#allocation1 + $0x1] ss:$2 sm:$0xff] %v505_v32 }
  0x80   : > { %v511_v35 = vld.sshfl [vmem:[#allocation1 + $0x8] sm:$0xff pattern:$0x75643120]  ;;  %v509_v36 = vld.sshfl [vmem:[#allocation1] sm:$0xff pattern:$0x75643120] }
  0x81   : > { %515 = vrot.lane.b32.xlu0 %v511_v35, %s904_s7  ;;  %513 = vrot.lane.b32.xlu2 %v509_v36, %s904_s7  ;;  %530 = vst [vmem:[#allocation1 + $0x1] ss:$2 sm:$0xff] %v527_v34 }
  0x88   : > { %v531_v38 = vld.sshfl [vmem:[#allocation1] sm:$0xff pattern:$0x75643120] }
  0x89   : > { %405 = vrot.lane.b32.xlu2 %v403_v18, %s900_s29  ;;  %533 = vrot.lane.b32.xlu1 %v531_v38, %s904_s7  ;;  %540 = vst [vmem:[#allocation1] ss:$2 sm:$0xff] %v538_v37 }
  0x90   : > { %v543_v40 = vld.sshfl [vmem:[#allocation1 + $0x8] sm:$0xff pattern:$0x75643120]  ;;  %v541_v41 = vld.sshfl [vmem:[#allocation1] sm:$0xff pattern:$0x75643120] }
  0x91   : > { %385 = vrot.lane.b32.xlu2 %v381_v16, %s900_s29  ;;  %547 = vrot.lane.b32.xlu0 %v543_v40, %s905_s8  ;;  %561 = vst [vmem:[#allocation1] ss:$2 sm:$0xff] %v559_v39 }
  0x92   : > { %545 = vrot.lane.b32.xlu1 %v541_v41, %s905_s8 }
  0x93   : > { %v1001_v44 = vpop.permute.xlu0 %322 }
  0x94   : > { %334 = vst.msk [vmem:[#allocation2 + $0x8] sm:$0xc] %vm333_vm1, %v1001_v44  ;;  %vm536_vm1 = vcmask 1044186  }
  0x98   : > { %v562_v42 = vld.sshfl [vmem:[#allocation1] sm:$0xff pattern:$0x75643120] }
  0x99   : > { %564 = vrot.lane.b32.xlu0 %v562_v42, %s905_s8 }
  0x9a   : > { %372 = vrot.lane.b32.xlu1 %v977_v13, %s899_s28 }
  0x9b   : > { %v388_v43 = vpop.permute.xlu2 %387 }
  0x9c   : > { %398 = vst.msk [vmem:[#allocation2 + $0x14] sm:$0xc] %vm397_vm0, %v388_v43  ;;  %v390_v6 = vrot.slane %v388_v43, 4  ;;  %vm520_vm0 = vcmask 744448  }
  0xa1   : > { %341 = vrot.lane.b32.xlu0 %v970_v8, %s898_s27 }
  0xa2   : > { %353 = vrot.lane.b32.xlu1 %v973_v10, %s899_s28 }
  0xa3   : > { %v1004_v45 = vpop.permute.xlu1 %355 }
  0xa4   : > { %366 = vst.msk [vmem:[#allocation2 + $0x14] sm:$0x3] %vm365_vm2, %v1004_v45  ;;  %vm557_vm2 = vcmask 730112   ;;  %v358_v33 = vrot.slane %v1004_v45, 4 }
  0xa9   : > { %320 = vrot.lane.b32.xlu0 %v966_v5, %s898_s27 }
  0xab   : > { %v418_v46 = vpop.permute.xlu2 %417 }
  0xac   : > { %v421_v48 = vrot.slane %v418_v46, 4 }
  0xb1   : > { %583 = vperm.xlu0 %873, %v580_v24  }
  0xbb   : > { %v452_v47 = vpop.permute.xlu2 %451 }
  0xbc   : > { %462 = vst.msk [vmem:[#allocation2 + $0x20] sm:$0xc] %vm461_vm3, %v452_v47  ;;  %v454_v56 = vrot.slane %v452_v47, 4  ;;  %vm552_vm3 = vcmask 736256  }
  0xc3   : > { %v470_v49 = vpop.permute.xlu2 %469  ;;  %v420_v50 = vpop.permute.xlu1 %419 }
  0xc4   : > { %473 = vst.msk [vmem:[#allocation2 + $0x20] sm:$0xc] %vm472_vm4, %v470_v49  ;;  %v422_v51 = vrot.slane %v420_v50, 4  ;;  %vm567_vm4 = vcmask 1042128  }
  0xc5   : > { %430 = vst.msk [vmem:[#allocation2 + $0x20] sm:$0x3] %vm429_vm5, %v420_v50  ;;  %vm375_vm5 = vcmask 1042416  }
  0xc6   : > { %v423_v52 = vsel %vm326_vm6, %v421_v48, %v422_v51 }
  0xc7   : > { %v425_v53 = vsel %vm424_vm7, %v418_v46, %v423_v52  ;;  %vm344_vm7 = vcmask 1044474   ;;  %v325_v52 = vrot.slane %v1001_v44, 4 }
  0xc8   : > { %428 = vst [vmem:[#allocation2 + $0x18] sm:$0x33] %v425_v53 }
  0xcb   : > { %v484_v54 = vpop.permute.xlu2 %483  ;;  %v437_v55 = vpop.permute.xlu1 %436 }
  0xcc   : > { %494 = vst.msk [vmem:[#allocation2 + $0x2c] sm:$0x3] %vm493_vm8, %v484_v54  ;;  %v486_v62 = vrot.slane %v484_v54, 4  ;;  %vm630_vm8 = vcmask 1041408  }
  0xcd   : > { %440 = vst.msk [vmem:[#allocation2 + $0x20] sm:$0x3] %vm439_vm9, %v437_v55  ;;  %vm360_vm9 = vcmask 1031168  }
  0xd3   : > { %v450_v57 = vpop.permute.xlu0 %449 }
  0xd4   : > { %v453_v58 = vrot.slane %v450_v57, 4  ;;  %v821_v51 = vld [vmem:[#allocation2 + $0x20] sm:$0xf] }
  0xd6   : > { %v455_v59 = vsel %vm326_vm6, %v453_v58, %v454_v56 }
  0xd7   : > { %v457_v60 = vsel %vm456_vm10, %v450_v57, %v455_v59  ;;  %vm328_vm10 = vcmask 1039360  }
  0xd8   : > { %460 = vst [vmem:[#allocation2 + $0x18] sm:$0xcc] %v457_v60 }
  0xdb   : > { %v514_v61 = vpop.permute.xlu2 %513 }
  0xdc   : > { %v517_v10 = vrot.slane %v514_v61, 4 }
  0xdf   : > { %v813_v43 = vld [vmem:[#allocation2 + $0x18] sm:$0xf]  ;;  %v833_v46 = vld [vmem:[#allocation2 + $0x1c] sm:$0xf] }
  0xe3   : > { %v406_v63 = vpop.permute.xlu2 %405  ;;  %v482_v0 = vpop.permute.xlu1 %481 }
  0xe4   : > { %409 = vst.msk [vmem:[#allocation2 + $0x14] sm:$0xc] %vm408_vm11, %v406_v63  ;;  %v485_v1 = vrot.slane %v482_v0, 4  ;;  %vm626_vm11 = vcmask 293888  }
  0xe6   : > { %v487_v2 = vsel %vm326_vm6, %v485_v1, %v486_v62 }
  0xe7   : > { %v489_v3 = vsel %vm488_vm12, %v482_v0, %v487_v2 }
  0xe8   : > { %492 = vst [vmem:[#allocation2 + $0x24] sm:$0x33] %v489_v3 }
  0xeb   : > { %v501_v4 = vpop.permute.xlu0 %500  ;;  %v386_v5 = vpop.permute.xlu2 %385 }
  0xec   : > { %504 = vst.msk [vmem:[#allocation2 + $0x2c] sm:$0x3] %vm503_vm13, %v501_v4  ;;  %v389_v7 = vrot.slane %v386_v5, 4 }
  0xee   : > { %v391_v8 = vsel %vm326_vm6, %v389_v7, %v390_v6 }
  0xef   : > { %v393_v9 = vsel %vm392_vm14, %v386_v5, %v391_v8 }
  0xf0   : > { %396 = vst [vmem:[#allocation2 + $0xc] sm:$0xcc] %v393_v9 }
  0xf3   : > { %v516_v11 = vpop.permute.xlu0 %515 }
  0xf4   : > { %v518_v12 = vrot.slane %v516_v11, 4  ;;  %526 = vst.msk [vmem:[#allocation2 + $0x2c] sm:$0xc] %vm525_vm15, %v516_v11 }
  0xf6   : > { %v519_v13 = vsel %vm326_vm6, %v517_v10, %v518_v12 }
  0xf7   : > { %v521_v14 = vsel %vm520_vm0, %v514_v61, %v519_v13  ;;  %v569_v61 = vld [vmem:[%s1041_s2] sm:$0xf] }
  0xf8   : > { %524 = vst [vmem:[#allocation2 + $0x24] sm:$0xcc] %v521_v14 }
  0xfb   : > { %v534_v15 = vpop.permute.xlu1 %533 }
  0xfc   : > { %537 = vst.msk [vmem:[#allocation2 + $0x2c] sm:$0xc] %vm536_vm1, %v534_v15 }
  0xff   : > { %v834_v35 = vld [vmem:[#allocation2 + $0x20] sm:$0xf0]  ;;  %v815_v40 = vld [vmem:[#allocation2 + $0x24] sm:$0xf0] }
 0x100   : > { %v814_v45 = vor.u32 %v834_v35, %v813_v43  ;;  %v818_v48 = vor.u32 %v833_v46, %v815_v40 }
 0x103   : > { %v548_v16 = vpop.permute.xlu0 %547  ;;  %v835_v50 = vld [vmem:[#allocation2 + $0x28] sm:$0xf0] }
 0x104   : > { %v550_v17 = vrot.slane %v548_v16, 4  ;;  %558 = vst.msk [vmem:[#allocation2 + $0x38] sm:$0x3] %vm557_vm2, %v548_v16  ;;  %v546_v18 = vpop.permute.xlu1 %545  ;;  %v822_v54 = vor.u32 %v835_v50, %v821_v51 }
 0x105   : > { %v549_v19 = vrot.slane %v546_v18, 4 }
 0x107   : > { %v551_v20 = vsel %vm326_vm6, %v549_v19, %v550_v17 }
 0x108   : > { %v553_v21 = vsel %vm552_vm3, %v546_v18, %v551_v20 }
 0x109   : > { %556 = vst [vmem:[#allocation2 + $0x30] sm:$0x33] %v553_v21 }
 0x10b   : > { %v565_v22 = vpop.permute.xlu0 %564 }
 0x10c   : > { %v373_v23 = vpop.permute.xlu1 %372  ;;  %568 = vst.msk [vmem:[#allocation2 + $0x38] sm:$0x3] %vm567_vm4, %v565_v22 }
 0x10d   : > { %376 = vst.msk [vmem:[#allocation2 + $0x14] sm:$0x3] %vm375_vm5, %v373_v23 }
 0x110   : > { %v578_v26 = vld [vmem:[#allocation2 + $0x30] sm:$0x33] }
 0x111   : > { %v608_v27 = vunpack.c.l.b16 %v578_v26  ;;  %v609_v28 = vunpack.c.h.b16 %v578_v26 }
 0x113   : > { %v342_v29 = vpop.permute.xlu0 %341  ;;  %v617_v30 = vpack.c.b16 %v608_v27, %v608_v27  ;;  %v618_v31 = vpack.c.b16 %v609_v28, %v609_v28  ;;  %v579_v32 = vld [vmem:[#allocation2 + $0x38] sm:$0x3] }
 0x114   : > { %v354_v34 = vpop.permute.xlu1 %353  ;;  %345 = vst.msk [vmem:[#allocation2 + $0x8] sm:$0xc] %vm344_vm7, %v342_v29  ;;  %v610_v36 = vunpack.c.l.b16 %v579_v32  ;;  %v832_v57 = vld [vmem:[#allocation2 + $0x10] sm:$0xf0] }
 0x115   : > { %v357_v37 = vrot.slane %v354_v34, 4  ;;  %v632_v38 = vsel %vm630_vm8, %v617_v30, 0  ;;  %v635_v39 = vsel %vm630_vm8, %v618_v31, 0 }
 0x116   : > { %645 = vmatpush.bf16.msra.mxu0 %v632_v38  ;;  %658 = vmatpush.bf16.msra.mxu1 %v635_v39  ;;  %v619_v41 = vpack.c.b16 %v610_v36, %v610_v36 }
 0x117   : > { %v359_v42 = vsel %vm326_vm6, %v357_v37, %v358_v33 }
 0x118   : > { %v361_v47 = vsel %vm360_vm9, %v354_v34, %v359_v42  ;;  %v638_v49 = vsel %vm630_vm8, %v619_v41, 0 }
 0x119   : > { %364 = vst [vmem:[#allocation2 + $0xc] sm:$0x33] %v361_v47  ;;  %671 = vmatpush.bf16.msra.mxu2 %v638_v49 }
 0x11a   : > { %646 = vmatpush.bf16.msra.mxu0 %v814_v45  ;;  %659 = vmatpush.bf16.msra.mxu1 %v818_v48 }
 0x11b   : > { %v321_v53 = vpop.permute.xlu0 %320  ;;  %v809_v56 = vld [vmem:[#allocation2 + $0x8] sm:$0xf] }
 0x11c   : > { %v324_v55 = vrot.slane %v321_v53, 4  ;;  %v810_v60 = vor.u32 %v832_v57, %v809_v56 }
 0x11d   : > { %672 = vmatpush.bf16.msra.mxu2 %v822_v54 }
 0x11e   : > { %v327_v58 = vsel %vm326_vm6, %v324_v55, %v325_v52 }
 0x11f   : > { %v329_v59 = vsel %vm328_vm10, %v321_v53, %v327_v58 }
 0x120   : > { %332 = vst [vmem:[#allocation2] sm:$0xcc] %v329_v59  ;;  %v831_v44 = vld [vmem:[#allocation2 + $0x8] sm:$0xf0]  ;;  %v803_v0 = vld [vmem:[#allocation2 + $0xc] sm:$0xf0] }
 0x121   : > { %673 = vmatpush.bf16.msra.mxu2 %v810_v60 }
 0x123   : > { %v584_v3 = vpop.permute.xlu0 %583 }
 0x124   : > { %825 = vmatmul.msk.bf16.vlgmr.msra.gmra.mxu2 %vm626_vm11, %v569_v61 }
 0x127   : > { %v801_v62 = vld [vmem:[#allocation2] sm:$0xf]  ;;  %v830_v63 = vld [vmem:[#allocation2 + $0x4] sm:$0xf] }
 0x128   : > { %v802_v1 = vor.u32 %v831_v44, %v801_v62  ;;  %v806_v2 = vor.u32 %v830_v63, %v803_v0 }
 0x12a   : > { %647 = vmatpush.bf16.msra.mxu0 %v802_v1  ;;  %660 = vmatpush.bf16.msra.mxu1 %v806_v2 }
 0x12d   : > { %823 = vmatmul.msk.bf16.vlgmr.msra.gmra.mxu0 %vm626_vm11, %v569_v61  ;;  %824 = vmatmul.msk.bf16.vlgmr.msra.gmra.mxu1 %vm626_vm11, %v569_v61 }
 0x1a7   : > { %v675_v4 = vpop.f32.mrf.mxu2 }
 0x1a8   : > { %v676_v5 = vadd.f32 %v675_v4, %v584_v3 }
 0x1aa   : > { %v681_v6 = vmax.f32 %v676_v5, 0.0  ;;  %v649_v7 = vpop.f32.mrf.mxu0  ;;  %v662_v8 = vpop.f32.mrf.mxu1 }
 0x1ab   : > { %v650_v9 = vadd.f32 %v649_v7, %v584_v3  ;;  %v663_v10 = vadd.f32 %v662_v8, %v584_v3 }
 0x1ac   : > { %v683_v11 = vpack.c.bf16 %v681_v6, %v681_v6 }
 0x1ad   : > { %v679_v12 = vmax.f32 %v650_v9, 0.0  ;;  %v680_v13 = vmax.f32 %v663_v10, 0.0 }
 0x1ae   : > { %685 = vst [vmem:[%s300_s20 + $0x8] sm:$0xf] %v683_v11 }
 0x1af   : > { %v682_v14 = vpack.c.bf16 %v680_v13, %v679_v12  ;;  %v677_v15 = vpop.f32.mrf.mxu2 }
 0x1b1   : > { %684 = vst [vmem:[%s300_s20] sm:$0xff] %v682_v14 }
 0x1b2   : > { %v651_v16 = vpop.f32.mrf.mxu0  ;;  %v664_v17 = vpop.f32.mrf.mxu1 }
 0x1b3 PF: > { %s14_s17 = sadd.s32 1, %s896_s17   ;;  %s1044_s15 = smov %s892_s16 }
 0x1b4   : > { %p11_p5 = scmp.ge.s32.totalorder %s14_s17, 4   ;;  %s1045_s16 = smov %s1047_s18 }
 0x1b6   :  { %13 = sbr.rel (!%p11_p5) target bundleno = 2 (0x2), region = 77 }

</bundles_post_ra>
